<compile_context>
chip_gen: v6e
topology: v6e:2x2x1
jax: 0.10.0
libtpu: 0.0.40
codegen_flags: <defaults>
</compile_context>

<pallas_src>
import functools

import jax
import jax.numpy as jnp
from jax import lax
from jax.experimental import pallas as pl
from jax.experimental.pallas import tpu as pltpu

_LANE = 128
_SUBLANE = 8
_NEG_BIG = -1e30  # bias value for padded logit columns -> exp() == 0


def _round_up(x, m):
    return (x + m - 1) // m * m


def _mlp_policy_kernel(x_ref, w1_ref, b1_ref, gamma_ref, beta_ref,
                       w2_ref, b2_ref, out_ref, *, h_real):
    # ----- Linear 1: bf16 operands on the MXU, f32 accumulate -----
    h = jnp.dot(x_ref[...], w1_ref[...],
                preferred_element_type=jnp.float32) + b1_ref[...]   # (TB, Hp) f32

    # ----- LayerNorm over the real hidden columns (eps=1e-5, affine) -----
    # Padded hidden columns of h are exactly 0 (zero-padded w1 cols / b1),
    # but they must not contribute to mean/var, so mask them explicitly.
    col = lax.broadcasted_iota(jnp.int32, h.shape, 1)
    mask = (col < h_real).astype(jnp.float32)
    inv_h = 1.0 / float(h_real)
    mean = jnp.sum(h * mask, axis=-1, keepdims=True) * inv_h
    centered = (h - mean) * mask
    var = jnp.sum(centered * centered, axis=-1, keepdims=True) * inv_h
    hn = centered * lax.rsqrt(var + 1e-5)
    hn = hn * gamma_ref[...] + beta_ref[...]        # padded gamma/beta are 0

    # ----- GELU (exact erf form, matches torch.nn.GELU default) -----
    g = 0.5 * hn * (1.0 + lax.erf(hn * 0.7071067811865476))

    # ----- Linear 2: bf16 operands on the MXU, f32 accumulate -----
    logits = jnp.dot(g.astype(jnp.bfloat16), w2_ref[...],
                     preferred_element_type=jnp.float32) + b2_ref[...]  # (TB, Ap)

    # ----- Softmax over last dim; padded columns have -1e30 bias -> weight 0 -----
    m = jnp.max(logits, axis=-1, keepdims=True)
    e = jnp.exp(logits - m)
    denom = jnp.sum(e, axis=-1, keepdims=True)
    out_ref[...] = (e * pl.reciprocal(denom, approx=True)).astype(out_ref.dtype)


def model_forward(x, w1, b1, gamma, beta, w2, b2, *, block_b=512):
    """x: (B, S); w1: (S, H); w2: (H, A); 1-D bias/affine params."""
    B, S = x.shape
    H = w1.shape[1]
    A = w2.shape[1]

    Sp = _round_up(S, _LANE)
    Hp = _round_up(H, _LANE)
    Ap = _round_up(A, _LANE)

    tb = min(block_b, _round_up(B, _SUBLANE))   # batch tile (rows per grid step)
    Bp = _round_up(B, tb)

    f32, bf16 = jnp.float32, jnp.bfloat16

    # Zero-pad to lane-dense shapes; bf16 for MXU operands, f32 for epilogue params.
    x_p = jnp.zeros((Bp, Sp), bf16).at[:B, :S].set(x.astype(bf16))
    w1_p = jnp.zeros((Sp, Hp), bf16).at[:S, :H].set(w1.astype(bf16))
    w2_p = jnp.zeros((Hp, Ap), bf16).at[:H, :A].set(w2.astype(bf16))
    b1_p = jnp.zeros((1, Hp), f32).at[0, :H].set(b1.astype(f32))
    g_p = jnp.zeros((1, Hp), f32).at[0, :H].set(gamma.astype(f32))
    be_p = jnp.zeros((1, Hp), f32).at[0, :H].set(beta.astype(f32))
    b2_p = jnp.full((1, Ap), _NEG_BIG, f32).at[0, :A].set(b2.astype(f32))

    grid = (Bp // tb,)

    cost = pl.CostEstimate(
        flops=2 * Bp * (Sp * Hp + Hp * Ap),
        transcendentals=Bp * (Hp + Ap),
        bytes_accessed=(x_p.size * 2 + w1_p.size * 2 + w2_p.size * 2
                        + (b1_p.size + g_p.size + be_p.size + b2_p.size) * 4
                        + Bp * Ap * 4),
    )

    out_p = pl.pallas_call(
        functools.partial(_mlp_policy_kernel, h_real=H),
        out_shape=jax.ShapeDtypeStruct((Bp, Ap), f32),
        grid=grid,
        in_specs=[
            pl.BlockSpec((tb, Sp), lambda i: (i, 0)),   # x: streamed over batch
            pl.BlockSpec((Sp, Hp), lambda i: (0, 0)),   # weights/params resident
            pl.BlockSpec((1, Hp), lambda i: (0, 0)),
            pl.BlockSpec((1, Hp), lambda i: (0, 0)),
            pl.BlockSpec((1, Hp), lambda i: (0, 0)),
            pl.BlockSpec((Hp, Ap), lambda i: (0, 0)),
            pl.BlockSpec((1, Ap), lambda i: (0, 0)),
        ],
        out_specs=pl.BlockSpec((tb, Ap), lambda i: (i, 0)),
        compiler_params=pltpu.CompilerParams(
            dimension_semantics=("parallel",)),
        cost_estimate=cost,
    )(x_p, w1_p, b1_p, g_p, be_p, w2_p, b2_p)

    return out_p[:B, :A]


if __name__ == "__main__":
    # Small shapes consistent with Model(state_size, action_size, hidden_size)
    batch, state_size, action_size, hidden_size = 8, 16, 4, 32

    key = jax.random.PRNGKey(0)
    kx, kw1, kb1, kw2, kb2 = jax.random.split(key, 5)

    x = jax.random.normal(kx, (batch, state_size), dtype=jnp.float32)

    # Deterministic parameter init (PyTorch Linear stores (out,in); we store (in,out)).
    lim1 = 1.0 / (state_size ** 0.5)
    w1 = jax.random.uniform(kw1, (state_size, hidden_size),
                            minval=-lim1, maxval=lim1, dtype=jnp.float32)
    b1 = jax.random.uniform(kb1, (hidden_size,),
                            minval=-lim1, maxval=lim1, dtype=jnp.float32)
    gamma = jnp.ones((hidden_size,), dtype=jnp.float32)   # LayerNorm weight init
    beta = jnp.zeros((hidden_size,), dtype=jnp.float32)   # LayerNorm bias init
    lim2 = 1.0 / (hidden_size ** 0.5)
    w2 = jax.random.uniform(kw2, (hidden_size, action_size),
                            minval=-lim2, maxval=lim2, dtype=jnp.float32)
    b2 = jax.random.uniform(kb2, (action_size,),
                            minval=-lim2, maxval=lim2, dtype=jnp.float32)

    out = model_forward(x, w1, b1, gamma, beta, w2, b2)
    jax.block_until_ready(out)

    # Reference mirrors the kernel's bf16 matmul-operand quantization
    # (f32 accumulate, f32 epilogue) — same architecture as the PyTorch module.
    q = lambda a: a.astype(jnp.bfloat16).astype(jnp.float32)
    h = q(x) @ q(w1) + b1
    mean = h.mean(-1, keepdims=True)
    var = ((h - mean) ** 2).mean(-1, keepdims=True)
    hn = (h - mean) / jnp.sqrt(var + 1e-5) * gamma + beta
    g = 0.5 * hn * (1.0 + jax.lax.erf(hn / jnp.sqrt(2.0)))
    logits = q(g) @ q(w2) + b2
    ref = jax.nn.softmax(logits, axis=1)

    assert out.shape == (batch, action_size)
    assert jnp.allclose(out, ref, atol=5e-3, rtol=5e-3), "mismatch vs reference"
    assert jnp.allclose(out.sum(axis=1), 1.0, atol=5e-3), "softmax rows must sum to 1"

    print("KERNEL_OK")
</pallas_src>

<mosaic_0001>
module attributes {stable_mosaic.version = 11 : i64} {
  func.func @_mlp_policy_kernel(%arg0: i32, %arg1: memref<8x128xbf16, #tpu.memory_space<vmem>>, %arg2: memref<128x128xbf16, #tpu.memory_space<vmem>>, %arg3: memref<1x128xf32, #tpu.memory_space<vmem>>, %arg4: memref<1x128xf32, #tpu.memory_space<vmem>>, %arg5: memref<1x128xf32, #tpu.memory_space<vmem>>, %arg6: memref<128x128xbf16, #tpu.memory_space<vmem>>, %arg7: memref<1x128xf32, #tpu.memory_space<vmem>>, %arg8: memref<8x128xf32, #tpu.memory_space<vmem>>) attributes {dimension_semantics = [#tpu.dimension_semantics<parallel>], iteration_bounds = array<i64: 1>, scalar_prefetch = 0 : i64, scratch_operands = 0 : i64, tpu.core_type = #tpu.core_type<tc>, window_params = [{transform_indices = @transform_0, window_bounds = array<i64: 8, 128>}, {pipeline_mode = #tpu.pipeline_mode<synchronous>, transform_indices = @transform_1, window_bounds = array<i64: 128, 128>}, {pipeline_mode = #tpu.pipeline_mode<synchronous>, transform_indices = @transform_2, window_bounds = array<i64: 1, 128>}, {pipeline_mode = #tpu.pipeline_mode<synchronous>, transform_indices = @transform_3, window_bounds = array<i64: 1, 128>}, {pipeline_mode = #tpu.pipeline_mode<synchronous>, transform_indices = @transform_4, window_bounds = array<i64: 1, 128>}, {pipeline_mode = #tpu.pipeline_mode<synchronous>, transform_indices = @transform_5, window_bounds = array<i64: 128, 128>}, {pipeline_mode = #tpu.pipeline_mode<synchronous>, transform_indices = @transform_6, window_bounds = array<i64: 1, 128>}, {transform_indices = @transform_7, window_bounds = array<i64: 8, 128>}]} {
    %c0 = arith.constant 0 : index
    %c0_0 = arith.constant 0 : index
    %0 = vector.load %arg1[%c0, %c0_0] : memref<8x128xbf16, #tpu.memory_space<vmem>>, vector<8x128xbf16>
    %c0_1 = arith.constant 0 : index
    %c0_2 = arith.constant 0 : index
    %1 = vector.load %arg2[%c0_1, %c0_2] : memref<128x128xbf16, #tpu.memory_space<vmem>>, vector<128x128xbf16>
    %cst = arith.constant dense<0.000000e+00> : vector<8x128xf32>
    %2 = tpu.matmul %0, %1, %cst {dimension_numbers = #tpu.dot_dimension_numbers<[1], [0], [0], [1], [0, 0, 1, 1], [], []>} : vector<8x128xbf16>, vector<128x128xbf16>, vector<8x128xf32> -> vector<8x128xf32>
    %c0_3 = arith.constant 0 : index
    %c0_4 = arith.constant 0 : index
    %3 = vector.load %arg3[%c0_3, %c0_4] : memref<1x128xf32, #tpu.memory_space<vmem>>, vector<1x128xf32>
    %4 = vector.broadcast %3 : vector<1x128xf32> to vector<8x128xf32>
    %5 = arith.addf %2, %4 : vector<8x128xf32>
    %6 = tpu.iota {dimensions = array<i32: 1>} : vector<8x128xi32>
    %c32_i32 = arith.constant 32 : i32
    %7 = vector.broadcast %c32_i32 : i32 to vector<8x128xi32>
    %8 = arith.cmpi slt, %6, %7 : vector<8x128xi32>
    %9 = arith.extui %8 : vector<8x128xi1> to vector<8x128xi32>
    %10 = arith.sitofp %9 : vector<8x128xi32> to vector<8x128xf32>
    %11 = arith.mulf %5, %10 : vector<8x128xf32>
    %cst_5 = arith.constant dense<0.000000e+00> : vector<8xf32>
    %12 = vector.multi_reduction <add>, %11, %cst_5 [1] : vector<8x128xf32> to vector<8xf32>
    %13 = vector.shape_cast %12 : vector<8xf32> to vector<8x1xf32>
    %cst_6 = arith.constant 3.125000e-02 : f32
    %14 = vector.broadcast %cst_6 : f32 to vector<8x1xf32>
    %15 = arith.mulf %13, %14 : vector<8x1xf32>
    %16 = vector.broadcast %15 : vector<8x1xf32> to vector<8x128xf32>
    %17 = arith.subf %5, %16 : vector<8x128xf32>
    %18 = arith.mulf %17, %10 : vector<8x128xf32>
    %19 = arith.mulf %18, %18 : vector<8x128xf32>
    %cst_7 = arith.constant dense<0.000000e+00> : vector<8xf32>
    %20 = vector.multi_reduction <add>, %19, %cst_7 [1] : vector<8x128xf32> to vector<8xf32>
    %21 = vector.shape_cast %20 : vector<8xf32> to vector<8x1xf32>
    %cst_8 = arith.constant 3.125000e-02 : f32
    %22 = vector.broadcast %cst_8 : f32 to vector<8x1xf32>
    %23 = arith.mulf %21, %22 : vector<8x1xf32>
    %cst_9 = arith.constant 9.99999974E-6 : f32
    %24 = vector.broadcast %cst_9 : f32 to vector<8x1xf32>
    %25 = arith.addf %23, %24 : vector<8x1xf32>
    %26 = math.rsqrt %25 : vector<8x1xf32>
    %27 = vector.broadcast %26 : vector<8x1xf32> to vector<8x128xf32>
    %28 = arith.mulf %18, %27 : vector<8x128xf32>
    %c0_10 = arith.constant 0 : index
    %c0_11 = arith.constant 0 : index
    %29 = vector.load %arg4[%c0_10, %c0_11] : memref<1x128xf32, #tpu.memory_space<vmem>>, vector<1x128xf32>
    %30 = vector.broadcast %29 : vector<1x128xf32> to vector<8x128xf32>
    %31 = arith.mulf %28, %30 : vector<8x128xf32>
    %c0_12 = arith.constant 0 : index
    %c0_13 = arith.constant 0 : index
    %32 = vector.load %arg5[%c0_12, %c0_13] : memref<1x128xf32, #tpu.memory_space<vmem>>, vector<1x128xf32>
    %33 = vector.broadcast %32 : vector<1x128xf32> to vector<8x128xf32>
    %34 = arith.addf %31, %33 : vector<8x128xf32>
    %cst_14 = arith.constant 5.000000e-01 : f32
    %35 = vector.broadcast %cst_14 : f32 to vector<8x128xf32>
    %36 = arith.mulf %35, %34 : vector<8x128xf32>
    %cst_15 = arith.constant 0.707106769 : f32
    %37 = vector.broadcast %cst_15 : f32 to vector<8x128xf32>
    %38 = arith.mulf %34, %37 : vector<8x128xf32>
    %39 = math.erf %38 : vector<8x128xf32>
    %cst_16 = arith.constant 1.000000e+00 : f32
    %40 = vector.broadcast %cst_16 : f32 to vector<8x128xf32>
    %41 = arith.addf %40, %39 : vector<8x128xf32>
    %42 = arith.mulf %36, %41 : vector<8x128xf32>
    %43 = arith.truncf %42 : vector<8x128xf32> to vector<8x128xbf16>
    %c0_17 = arith.constant 0 : index
    %c0_18 = arith.constant 0 : index
    %44 = vector.load %arg6[%c0_17, %c0_18] : memref<128x128xbf16, #tpu.memory_space<vmem>>, vector<128x128xbf16>
    %cst_19 = arith.constant dense<0.000000e+00> : vector<8x128xf32>
    %45 = tpu.matmul %43, %44, %cst_19 {dimension_numbers = #tpu.dot_dimension_numbers<[1], [0], [0], [1], [0, 0, 1, 1], [], []>} : vector<8x128xbf16>, vector<128x128xbf16>, vector<8x128xf32> -> vector<8x128xf32>
    %c0_20 = arith.constant 0 : index
    %c0_21 = arith.constant 0 : index
    %46 = vector.load %arg7[%c0_20, %c0_21] : memref<1x128xf32, #tpu.memory_space<vmem>>, vector<1x128xf32>
    %47 = vector.broadcast %46 : vector<1x128xf32> to vector<8x128xf32>
    %48 = arith.addf %45, %47 : vector<8x128xf32>
    %cst_22 = arith.constant dense<0xFF800000> : vector<8xf32>
    %49 = vector.multi_reduction <maximumf>, %48, %cst_22 [1] : vector<8x128xf32> to vector<8xf32>
    %50 = vector.shape_cast %49 : vector<8xf32> to vector<8x1xf32>
    %51 = vector.broadcast %50 : vector<8x1xf32> to vector<8x128xf32>
    %52 = arith.subf %48, %51 : vector<8x128xf32>
    %53 = math.exp %52 : vector<8x128xf32>
    %cst_23 = arith.constant dense<0.000000e+00> : vector<8xf32>
    %54 = vector.multi_reduction <add>, %53, %cst_23 [1] : vector<8x128xf32> to vector<8xf32>
    %55 = vector.shape_cast %54 : vector<8xf32> to vector<8x1xf32>
    %56 = tpu.reciprocal %55 {approx = true} : vector<8x1xf32> -> vector<8x1xf32>
    %57 = vector.broadcast %56 : vector<8x1xf32> to vector<8x128xf32>
    %58 = arith.mulf %53, %57 : vector<8x128xf32>
    %c0_24 = arith.constant 0 : index
    %c0_25 = arith.constant 0 : index
    %59 = vector.load %arg8[%c0_24, %c0_25] : memref<8x128xf32, #tpu.memory_space<vmem>>, vector<8x128xf32>
    tpu.vector_store %arg8[%c0_24, %c0_25], %58 {strides = array<i32>} : memref<8x128xf32, #tpu.memory_space<vmem>>, vector<8x128xf32>,
    return
  }
  func.func @transform_0(%arg0: i32) -> (i32, i32) {
    %c0_i32 = arith.constant 0 : i32
    %c0_i32_0 = arith.constant 0 : i32
    return %arg0, %c0_i32 : i32, i32
  }
  func.func @transform_1(%arg0: i32) -> (i32, i32) {
    %c0_i32 = arith.constant 0 : i32
    %c0_i32_0 = arith.constant 0 : i32
    %c0_i32_1 = arith.constant 0 : i32
    return %c0_i32, %c0_i32_0 : i32, i32
  }
  func.func @transform_2(%arg0: i32) -> (i32, i32) {
    %c0_i32 = arith.constant 0 : i32
    %c0_i32_0 = arith.constant 0 : i32
    %c0_i32_1 = arith.constant 0 : i32
    return %c0_i32, %c0_i32_0 : i32, i32
  }
  func.func @transform_3(%arg0: i32) -> (i32, i32) {
    %c0_i32 = arith.constant 0 : i32
    %c0_i32_0 = arith.constant 0 : i32
    %c0_i32_1 = arith.constant 0 : i32
    return %c0_i32, %c0_i32_0 : i32, i32
  }
  func.func @transform_4(%arg0: i32) -> (i32, i32) {
    %c0_i32 = arith.constant 0 : i32
    %c0_i32_0 = arith.constant 0 : i32
    %c0_i32_1 = arith.constant 0 : i32
    return %c0_i32, %c0_i32_0 : i32, i32
  }
  func.func @transform_5(%arg0: i32) -> (i32, i32) {
    %c0_i32 = arith.constant 0 : i32
    %c0_i32_0 = arith.constant 0 : i32
    %c0_i32_1 = arith.constant 0 : i32
    return %c0_i32, %c0_i32_0 : i32, i32
  }
  func.func @transform_6(%arg0: i32) -> (i32, i32) {
    %c0_i32 = arith.constant 0 : i32
    %c0_i32_0 = arith.constant 0 : i32
    %c0_i32_1 = arith.constant 0 : i32
    return %c0_i32, %c0_i32_0 : i32, i32
  }
  func.func @transform_7(%arg0: i32) -> (i32, i32) {
    %c0_i32 = arith.constant 0 : i32
    %c0_i32_0 = arith.constant 0 : i32
    return %arg0, %c0_i32 : i32, i32
  }
}

</mosaic_0001>

<bundles_post_ra>
// kernel: tpu_custom_call.1
= control target key start
LH: loop header
LB: loop body
LE: loop exit
PB: predicated region body
PF: predicated region fallthrough
CT: control target
= control target key end

     0   :  { %12 = vsyncpa [#allocation3], 0  ;;  %s644_s0 = inlined_call_operand.hbm [shape: bf16[8,128], index: 0, kind: input, shape index: {}]   ;;  %s645_s1 = inlined_call_operand.hbm [shape: bf16[128,128], index: 1, kind: input, shape index: {}]   ;;  %s646_s2 = inlined_call_operand.vmem [shape: f32[1,128], index: 2, kind: input, shape index: {}]   ;;  %s647_s3 = inlined_call_operand.vmem [shape: f32[1,128], index: 3, kind: input, shape index: {}]   ;;  %s648_s4 = inlined_call_operand.vmem [shape: f32[1,128], index: 4, kind: input, shape index: {}]   ;;  %s649_s5 = inlined_call_operand.hbm [shape: bf16[128,128], index: 5, kind: input, shape index: {}]   ;;  %s650_s6 = inlined_call_operand.vmem [shape: f32[1,128], index: 6, kind: input, shape index: {}]   ;;  %s651_s7 = inlined_call_operand.hbm [shape: f32[8,128], index: 7, kind: output, shape index: {}]  }
   0x1   :  { %13 = vsyncpa [#allocation6], 0 }
   0x2   :  { %14 = vsyncpa [#allocation4], 0  ;;  %s553_s24 = smov [#allocation5]  }
   0x3   :  { %s30_s25 = sshll.u32 %s553_s24, 4  ;;  %s31_s25 = int_to_ptr.vmem [resolvable:$true] %s30_s25 }
   0x4   :  { %s475_s26 = scalar_lea.vmem %s31_s25, 1024  ;;  %p480_p1 = scmp.lt.s32.totalorder %s31_s25, %s31_s25 }
   0x5   :  { %p476_p0 = scmp.ne.s32.totalorder %s31_s25, %s475_s26  ;;  %p481_p2 = scmp.lt.s32.totalorder %s475_s26, %s475_s26 }
   0x7   :  { %p482_p3 = por %p481_p2, %p480_p1 }
   0x9   :  { %p483_p4 = pnand %p482_p3, %p476_p0 }
   0xb   :  { %486 = shalt.err (!%p483_p4)
}
   0xc   :  { %s554_s27 = smov 64   ;;  %s555_s28 = smov 4  }
   0xd   :  { %36 = dma.hbm_to_vmem [thread:$0]  %s645_s1, 1024, %s31_s25, [#allocation6], %s554_s27, %s554_s27, %s555_s28  }
   0xe   :  { %s556_s8 = smov [#allocation2]   ;;  %s557_s10 = smov [#allocation7]  }
   0xf   :  { %s21_s9 = sshll.u32 %s556_s8, 4  ;;  %s48_s11 = sshll.u32 %s557_s10, 4  ;;  %s22_s9 = int_to_ptr.vmem [resolvable:$true] %s21_s9  ;;  %s49_s11 = int_to_ptr.vmem [resolvable:$true] %s48_s11 }
  0x10   :  { %s495_s12 = scalar_lea.vmem %s22_s9, 64  ;;  %p500_p6 = scmp.lt.s32.totalorder %s22_s9, %s22_s9 }
  0x11   :  { %p496_p5 = scmp.ne.s32.totalorder %s22_s9, %s495_s12  ;;  %p501_p7 = scmp.lt.s32.totalorder %s495_s12, %s495_s12 }
  0x13   :  { %p502_p8 = por %p501_p7, %p500_p6 }
  0x15   :  { %p503_p9 = pnand %p502_p8, %p496_p5 }
  0x17   :  { %506 = shalt.err (!%p503_p9)
}
  0x18   :  { %24 = dma.hbm_to_vmem [thread:$0]  %s644_s0, 64, %s22_s9, [#allocation3]  }
  0x19   :  { %s515_s15 = scalar_lea.vmem %s49_s11, 1024  ;;  %p520_p11 = scmp.lt.s32.totalorder %s49_s11, %s49_s11 }
  0x1a   :  { %p516_p10 = scmp.ne.s32.totalorder %s49_s11, %s515_s15  ;;  %p521_p12 = scmp.lt.s32.totalorder %s515_s15, %s515_s15 }
  0x1c   :  { %p522_p13 = por %p521_p12, %p520_p11 }
  0x1e   :  { %p523_p0 = pnand %p522_p13, %p516_p10 }
  0x20   :  { %526 = shalt.err (!%p523_p0)
}
  0x21   :  { %54 = dma.hbm_to_vmem [thread:$0]  %s649_s5, 1024, %s49_s11, [#allocation6], %s554_s27, %s554_s27, %s555_s28  }
  0x22   :  { %547 = dma.done.wait [#allocation3], 64  }
  0x23   :  { %548 = vsyncadd [#allocation3], 4294967232 }
  0x24   :  { %549 = dma.done.wait [#allocation6], 2048  }
  0x25   :  { %550 = vsyncadd [#allocation6], 4294965248  ;;  %v558_v0 = vmov 0.0   ;;  %vm559_vm0 = vmmov 0   ;;  %v443_v1 = vld [vmem:[#allocation5 + $0x38] sm:$0xff]   ;;  %v444_v2 = vld [vmem:[#allocation5 + $0x30] sm:$0xff]   ;;  %v179_v10 = vlaneseq }
  0x26   :  { %395 = vmatprep.subr.bf16.mxu0 %v558_v0  ;;  %411 = vmatprep.mubr.msk.bf16.mxu0 %vm559_vm0, %v558_v0  ;;  %v445_v3 = vld [vmem:[#allocation5 + $0x28] sm:$0xff]   ;;  %v446_v4 = vld [vmem:[#allocation5 + $0x20] sm:$0xff]   ;;  %v447_v5 = vld [vmem:[#allocation5 + $0x18] sm:$0xff]  }
  0x27   :  { %415 = vmatprep.subr.bf16.mxu1 %v558_v0  ;;  %431 = vmatprep.mubr.msk.bf16.mxu1 %vm559_vm0, %v558_v0  ;;  %v448_v6 = vld [vmem:[#allocation5 + $0x10] sm:$0xff]   ;;  %v449_v7 = vld [vmem:[#allocation5 + $0x8] sm:$0xff]   ;;  %v450_v8 = vld [vmem:[#allocation5] sm:$0xff]   ;;  %v180_v11 = vand.u32 127, %v179_v10 }
  0x28   :  { %396 = vmatpush3.bf16.msra.mxu0 %v443_v1  ;;  %v67_v9 = vld [vmem:[#allocation2] sm:$0xf]  ;;  %v452_v26 = vld [vmem:[#allocation7 + $0x30] sm:$0xff]   ;;  %v453_v27 = vld [vmem:[#allocation7 + $0x28] sm:$0xff]  }
  0x29   :  { %397 = vmatprep.subr.bf16.mxu0 %v558_v0  ;;  %vm181_vm1 = vcmp.lt.s32.totalorder %v180_v11, 32  ;;  %v356_v12 = vld [vmem:[%s646_s2] ss:$0 sm:$0xff]  ;;  %v454_v28 = vld [vmem:[#allocation7 + $0x20] sm:$0xff]   ;;  %v456_v30 = vld [vmem:[#allocation7 + $0x10] sm:$0xff]  }
  0x2a   :  { %v365_v14 = vsel %vm181_vm1, 1.0, %v558_v0  ;;  %v451_v25 = vld [vmem:[#allocation7 + $0x38] sm:$0xff]   ;;  %v457_v31 = vld [vmem:[#allocation7 + $0x8] sm:$0xff]   ;;  %v458_v32 = vld [vmem:[#allocation7] sm:$0xff]  }
  0x2b   :  { %416 = vmatpush3.bf16.msra.mxu1 %v451_v25  ;;  %v455_v29 = vld [vmem:[#allocation7 + $0x18] sm:$0xff]  }
  0x2c   :  { %398 = vmatpush3.bf16.msra.mxu0 %v444_v2  ;;  %417 = vmatprep.subr.bf16.mxu1 %v558_v0  ;;  %v366_v37 = vld [vmem:[%s647_s3] ss:$0 sm:$0xff]  ;;  %s560_s3 = smov [#allocation8]  }
  0x2d   :  { %399 = vmatprep.subr.bf16.mxu0 %v558_v0  ;;  %v367_v39 = vld [vmem:[%s648_s4] ss:$0 sm:$0xff]  ;;  %s346_s4 = sshll.u32 %s560_s3, 4  ;;  %s347_s4 = int_to_ptr.vmem [resolvable:$true] %s346_s4 }
  0x2e   :  { %v368_v48 = vld [vmem:[%s650_s6] ss:$0 sm:$0xff]  ;;  %s527_s6 = scalar_lea.vmem %s347_s4, 128  ;;  %p532_p2 = scmp.lt.s32.totalorder %s347_s4, %s347_s4 }
  0x2f   :  { %418 = vmatpush3.bf16.msra.mxu1 %v452_v26  ;;  %p528_p1 = scmp.ne.s32.totalorder %s347_s4, %s527_s6  ;;  %p533_p3 = scmp.lt.s32.totalorder %s527_s6, %s527_s6 }
  0x30   :  { %400 = vmatpush3.bf16.msra.mxu0 %v445_v3  ;;  %419 = vmatprep.subr.bf16.mxu1 %v558_v0 }
  0x31   :  { %401 = vmatprep.subr.bf16.mxu0 %v558_v0  ;;  %p534_p4 = por %p533_p3, %p532_p2 }
  0x33   :  { %420 = vmatpush3.bf16.msra.mxu1 %v453_v27  ;;  %p535_p5 = pnand %p534_p4, %p528_p1 }
  0x34   :  { %402 = vmatpush3.bf16.msra.mxu0 %v446_v4  ;;  %421 = vmatprep.subr.bf16.mxu1 %v558_v0 }
  0x35   :  { %403 = vmatprep.subr.bf16.mxu0 %v558_v0 }
  0x37   :  { %422 = vmatpush3.bf16.msra.mxu1 %v454_v28 }
  0x38   :  { %404 = vmatpush3.bf16.msra.mxu0 %v447_v5  ;;  %423 = vmatprep.subr.bf16.mxu1 %v558_v0 }
  0x39   :  { %405 = vmatprep.subr.bf16.mxu0 %v558_v0 }
  0x3b   :  { %424 = vmatpush3.bf16.msra.mxu1 %v455_v29 }
  0x3c   :  { %406 = vmatpush3.bf16.msra.mxu0 %v448_v6  ;;  %425 = vmatprep.subr.bf16.mxu1 %v558_v0 }
  0x3d   :  { %407 = vmatprep.subr.bf16.mxu0 %v558_v0 }
  0x3f   :  { %426 = vmatpush3.bf16.msra.mxu1 %v456_v30 }
  0x40   :  { %408 = vmatpush3.bf16.msra.mxu0 %v449_v7  ;;  %427 = vmatprep.subr.bf16.mxu1 %v558_v0 }
  0x41   :  { %409 = vmatprep.subr.bf16.mxu0 %v558_v0 }
  0x43   :  { %428 = vmatpush3.bf16.msra.mxu1 %v457_v31 }
  0x44   :  { %410 = vmatpush3.bf16.msra.mxu0 %v450_v8  ;;  %429 = vmatprep.subr.bf16.mxu1 %v558_v0 }
  0x47   :  { %412 = vmatmul.mubr.bf16.vlgmr.msra.gmra.mxu0 %v67_v9  ;;  %430 = vmatpush3.bf16.msra.mxu1 %v458_v32 }
 0x107   :  { %v173_v13 = vpop.f32.mrf.mxu0 }
 0x108   :  { %v174_v15 = vadd.f32 %v356_v12, %v173_v13 }
 0x109   :  { %v413_v16 = vpop.f32.mrf.mxu0 }
 0x10a   :  { %v184_v17 = vmul.f32 %v365_v14, %v174_v15 }
 0x10b   :  { %v176_v18 = vpop.f32.mrf.mxu0 }
 0x10c   :  { %185 = vadd.xlane.f32.xlu0 %v184_v17 }
 0x10d   :  { %v414_v19 = vpop.f32.mrf.mxu0 }
 0x195   :  { %v186_v20 = vpop.xlane.xlu0 %185 }
 0x196   :  { %v187_v21 = vmul.f32 0.03125, %v186_v20 }
 0x198   :  { %v188_v22 = vsub.f32 %v174_v15, %v187_v21 }
 0x19a   :  { %v189_v23 = vmul.f32 %v365_v14, %v188_v22 }
 0x19c   :  { %v190_v24 = vmul.f32 %v189_v23, %v189_v23 }
 0x19e   :  { %191 = vadd.xlane.f32.xlu0 %v190_v24 }
 0x227   :  { %v192_v33 = vpop.xlane.xlu0 %191 }
 0x228   :  { %v193_v34 = vmul.f32 0.03125, %v192_v33 }
 0x22a   :  { %v194_v35 = vadd.f32 1e-05, %v193_v34 }
 0x22c   :  { %459 = vrsqrt.f32 %v194_v35 }
 0x239   :  { %v460_v36 = vpop.eup %459 }
 0x23a   :  { %v196_v38 = vmul.f32 %v460_v36, %v189_v23 }
 0x23c   :  { %v204_v40 = vmul.f32 %v366_v37, %v196_v38 }
 0x23e   :  { %v212_v41 = vadd.f32 %v367_v39, %v204_v40 }
 0x240   :  { %v214_v42 = vmul.f32 0.70710677, %v212_v41  ;;  %v213_v44 = vmul.f32 0.5, %v212_v41 }
 0x242   :  { %461 = verf.f32 %v214_v42 }
 0x24f   :  { %v462_v43 = vpop.eup %461 }
 0x250   :  { %v216_v45 = vadd.f32 1.0, %v462_v43 }
 0x252   :  { %v217_v46 = vmul.f32 %v216_v45, %v213_v44 }
 0x254   :  { %v218_v47 = vpack.c.bf16 %v217_v46, %v217_v46 }
 0x256   :  { %432 = vmatmul.mubr.bf16.vlgmr.msra.gmra.mxu1 %v218_v47 }
 0x316   :  { %v324_v49 = vpop.f32.mrf.mxu1 }
 0x317   :  { %v325_v50 = vadd.f32 %v368_v48, %v324_v49 }
 0x318   :  { %v433_v51 = vpop.f32.mrf.mxu1 }
 0x319   :  { %330 = vmax.xlane.f32.xlu1 %v325_v50 }
 0x31a   :  { %v327_v52 = vpop.f32.mrf.mxu1 }
 0x31c   :  { %v434_v53 = vpop.f32.mrf.mxu1 }
 0x3a2   :  { %v331_v54 = vpop.xlane.xlu1 %330 }
 0x3a3   :  { %v332_v55 = vsub.f32 %v325_v50, %v331_v54 }
 0x3a5   :  { %v333_v56 = vmul.f32 1.442695, %v332_v55 }
 0x3a7   :  { %463 = vpow2.f32 %v333_v56 }
 0x3b4   :  { %v464_v57 = vpop.eup %463 }
 0x3b5   :  { %335 = vadd.xlane.f32.xlu1 %v464_v57 }
 0x43e   :  { %v336_v58 = vpop.xlane.xlu1 %335 }
 0x43f   :  { %465 = vrcp.f32 %v336_v58 }
 0x44c   :  { %v466_v59 = vpop.eup %465 }
 0x44d   :  { %v338_v60 = vmul.f32 %v466_v59, %v464_v57 }
 0x44f   :  { %339 = vst [vmem:[#allocation8] sm:$0xff] %v338_v60 }
 0x450   :  { %538 = shalt.err (!%p535_p5)
}
 0x451   :  { %349 = dma.vmem_to_hbm [thread:$0]  %s347_s4, 128, %s651_s7, [#allocation4]  }
 0x452   :  { %551 = dma.done.wait [#allocation4], 128  }
 0x453   :  { %552 = vsyncadd [#allocation4], 4294967168 }
 0x454   :  { %353 = vsyncpa [#allocation3], 1 }
 0x455   :  { %354 = vsyncpa [#allocation6], 1 }
 0x456   :  { %355 = vsyncpa [#allocation4], 1 }

</bundles_post_ra>
